<compile_context>
chip_gen: v7x
topology: tpu7x:2x2x1
jax: 0.10.0
libtpu: 0.0.40
codegen_flags: <defaults>
</compile_context>

<pallas_src>
import functools

import jax
import jax.numpy as jnp
from jax.experimental import pallas as pl
from jax.experimental.pallas import tpu as pltpu


# Packed min-tile for the second-to-last block dim when it is NOT the full
# array extent: f32 -> 8 sublanes, bf16/f16 -> 16, int8/uint8/fp8 -> 32.
_SUBLANE = {4: 8, 2: 16, 1: 32}
_LANE = 128


def _device_budgets():
    """(block_budget_bytes, vmem_limit_bytes, small_image_bytes) per generation."""
    vmem_cap = None
    try:
        info = pltpu.get_tpu_info()
        vmem_cap = getattr(info, "vmem_capacity_bytes", None)
    except Exception:  # API variance / not on TPU: fall back to conservative values
        vmem_cap = None
    if vmem_cap is not None and vmem_cap >= 96 * 1024 * 1024:
        # v5e / v6e: 128 MiB physical VMEM -> bigger tiles, fewer grid steps.
        return 16 * 1024 * 1024, 64 * 1024 * 1024, 512 * 1024
    # v7x (64 MiB physical, 32 MiB scoped default) or unknown: conservative.
    return 12 * 1024 * 1024, 32 * 1024 * 1024, 1024 * 1024


def _round_up(x, m):
    return ((x + m - 1) // m) * m


def _choose_tile(axis_len, max_units, unit):
    """Split `axis_len` into tiles that are multiples of `unit` (or the whole
    axis), each at most ~max_units long, dividing the axis as evenly as
    possible and preferring an even tile count >= 2 (pipelining + balanced
    split across v7x's two TensorCores).  Returns (tile, num_tiles)."""
    if axis_len <= unit or max_units >= axis_len:
        if axis_len >= 2 * unit:
            n = 2
        else:
            return axis_len, 1
    else:
        cap = max(unit, (max_units // unit) * unit)
        n = pl.cdiv(axis_len, cap)
        if axis_len >= 2 * unit:
            n = max(n, 2)
    if n % 2 == 1 and axis_len >= (n + 1) * unit:
        n += 1  # even tile count keeps v7x's two cores balanced
    tile = min(axis_len, _round_up(pl.cdiv(axis_len, n), unit))
    return tile, pl.cdiv(axis_len, tile)


def _pad_width_kernel(x_ref, o_ref, *, pad_left, w, fill):
    """Blocks: x (bc, th, w), o (bc, th, out_w). Border fill + one interior copy.

    The interior store lands at lane offset `pad_left` (lane rotate + masked
    seam stores); acceptable while the kernel is DMA-bound.
    """
    bc, th, out_w = o_ref.shape
    if pad_left > 0:
        o_ref[:, :, :pad_left] = jnp.full((bc, th, pad_left), fill, o_ref.dtype)
    o_ref[:, :, pad_left:pad_left + w] = x_ref[...]
    pad_right = out_w - pad_left - w
    if pad_right > 0:
        o_ref[:, :, pad_left + w:] = jnp.full((bc, th, pad_right), fill, o_ref.dtype)


def _pad_height_kernel(x_ref, o_ref, *, pad_top, h, fill):
    """Blocks: x (bc, h, tw), o (bc, out_h, tw). Border fill + one interior copy."""
    bc, out_h, tw = o_ref.shape
    if pad_top > 0:
        o_ref[:, :pad_top, :] = jnp.full((bc, pad_top, tw), fill, o_ref.dtype)
    o_ref[:, pad_top:pad_top + h, :] = x_ref[...]
    pad_bottom = out_h - pad_top - h
    if pad_bottom > 0:
        o_ref[:, pad_top + h:, :] = jnp.full((bc, pad_bottom, tw), fill, o_ref.dtype)


def _pad_to_square_pallas(image, pad_top, pad_left, out_h, out_w, fill,
                          block_budget, vmem_limit):
    c, h, w = image.shape
    itemsize = jnp.dtype(image.dtype).itemsize
    sub = _SUBLANE.get(itemsize, 8)

    if out_w != w:
        # h > w: pad width.  Tile over H (unchanged sublane axis); the padded
        # width axis stays whole so all offsets are static slices.
        per_unit = (w + out_w) * itemsize              # in+out bytes per row
        unit = sub                                     # dtype-aware sublane tile
        axis_len = h
        kernel = functools.partial(_pad_width_kernel, pad_left=pad_left, w=w, fill=fill)
    else:
        # h < w: pad height.  Tile over W (unchanged lane axis) in 128-lane
        # multiples so stores stay lane-aligned and unmasked.
        per_unit = (h + out_h) * itemsize              # in+out bytes per column
        unit = _LANE
        axis_len = w
        kernel = functools.partial(_pad_height_kernel, pad_top=pad_top, h=h, fill=fill)

    # Fold the channel axis into the block when even a minimal tile of all
    # channels fits the budget (fewer grid steps, bigger DMAs).
    fold_c = c * per_unit * min(unit, axis_len) <= block_budget
    bc = c if fold_c else 1
    max_units = max(1, block_budget // (per_unit * bc))
    tile, n_tiles = _choose_tile(axis_len, max_units, unit)

    if out_w != w:
        in_block, out_block = (bc, tile, w), (bc, tile, out_w)
        if fold_c:
            idx_map = lambda ti: (0, ti, 0)
        else:
            idx_map = lambda ti, ci: (ci, ti, 0)
    else:
        in_block, out_block = (bc, h, tile), (bc, out_h, tile)
        if fold_c:
            idx_map = lambda ti: (0, 0, ti)
        else:
            idx_map = lambda ti, ci: (ci, 0, ti)

    grid = (n_tiles,) if fold_c else (n_tiles, c)       # spatial tiles lead
    semantics = ("parallel",) if fold_c else ("parallel", "parallel")

    in_bytes = c * h * w * itemsize
    out_bytes = c * out_h * out_w * itemsize

    return pl.pallas_call(
        kernel,
        out_shape=jax.ShapeDtypeStruct((c, out_h, out_w), image.dtype),
        grid=grid,
        in_specs=[pl.BlockSpec(in_block, idx_map)],
        out_specs=pl.BlockSpec(out_block, idx_map),
        compiler_params=pltpu.CompilerParams(
            dimension_semantics=semantics,
            vmem_limit_bytes=vmem_limit,
        ),
        cost_estimate=pl.CostEstimate(
            flops=0, transcendentals=0, bytes_accessed=in_bytes + out_bytes
        ),
    )(image)


def pad_to_square(image, fill=0, padding_mode="constant", *,
                  force_pallas=False, block_budget_bytes=None):
    """Pallas implementation of PadToSquare.forward for a CHW image."""
    if padding_mode != "constant":
        # TODO(synk): only 'constant' padding_mode is implemented (reflect/replicate not ported).
        raise NotImplementedError("only constant padding_mode supported")

    c, h, w = image.shape
    if h == w:
        return image
    if h > w:
        padding = (h - w) // 2
        pad_top, pad_left = 0, padding
        out_h, out_w = h, w + 2 * padding
        pad_widths = ((0, 0), (0, 0), (padding, padding))
    else:
        padding = (w - h) // 2
        pad_top, pad_left = padding, 0
        out_h, out_w = h + 2 * padding, w
        pad_widths = ((0, 0), (padding, padding), (0, 0))

    if out_h == h and out_w == w:  # |h - w| == 1 -> zero padding, identity.
        return image

    block_budget, vmem_limit, small_bytes = _device_budgets()
    if block_budget_bytes is not None:
        block_budget = block_budget_bytes

    # Small/medium images: XLA's fused pad beats pallas_call fixed dispatch.
    image_bytes = c * h * w * jnp.dtype(image.dtype).itemsize
    if image_bytes < small_bytes and not force_pallas:
        return jnp.pad(image, pad_widths, mode="constant", constant_values=fill)

    return _pad_to_square_pallas(image, pad_top, pad_left, out_h, out_w, fill,
                                 block_budget, vmem_limit)


if __name__ == "__main__":
    key = jax.random.PRNGKey(0)
    k1, k2, k3, k4, k5 = jax.random.split(key, 5)

    # Tall image (h > w): pad width; default budget -> channels folded, 2 H-tiles.
    img_tall = jax.random.normal(k1, (4, 16, 8), dtype=jnp.float32)
    out_tall = jax.block_until_ready(pad_to_square(img_tall, force_pallas=True))
    ref_tall = jnp.pad(img_tall, ((0, 0), (0, 0), (4, 4)))
    assert out_tall.shape == (4, 16, 16), out_tall.shape
    assert jnp.array_equal(out_tall, ref_tall), "tall-image mismatch"

    # Wide image (w > h): pad height (lane-aligned path).
    img_wide = jax.random.normal(k2, (4, 8, 16), dtype=jnp.float32)
    out_wide = jax.block_until_ready(pad_to_square(img_wide, force_pallas=True))
    ref_wide = jnp.pad(img_wide, ((0, 0), (4, 4), (0, 0)))
    assert out_wide.shape == (4, 16, 16), out_wide.shape
    assert jnp.array_equal(out_wide, ref_wide), "wide-image mismatch"

    # Odd h-w difference (matches the PyTorch module) + ragged last tile (21 rows, tile 16).
    img_odd = jax.random.normal(k3, (3, 21, 8), dtype=jnp.float32)
    out_odd = jax.block_until_ready(pad_to_square(img_odd, force_pallas=True))
    ref_odd = jnp.pad(img_odd, ((0, 0), (0, 0), (6, 6)))
    assert out_odd.shape == (3, 21, 20), out_odd.shape
    assert jnp.array_equal(out_odd, ref_odd), "odd-difference mismatch"

    # uint8 (packed dtype, 32-row sublane tiles); tiny budget forces 3 tiles + ragged last.
    img_u8 = jax.random.randint(k4, (3, 80, 16), 0, 256).astype(jnp.uint8)
    out_u8 = jax.block_until_ready(
        pad_to_square(img_u8, fill=7, force_pallas=True, block_budget_bytes=16 * 1024))
    ref_u8 = jnp.pad(img_u8, ((0, 0), (0, 0), (32, 32)), constant_values=jnp.uint8(7))
    assert jnp.array_equal(out_u8, ref_u8), "uint8 mismatch"

    # bf16 (16-row sublane tiles); tiny budget forces 3 even tiles.
    img_bf = jax.random.normal(k5, (3, 48, 8), dtype=jnp.bfloat16)
    out_bf = jax.block_until_ready(
        pad_to_square(img_bf, force_pallas=True, block_budget_bytes=8 * 1024))
    ref_bf = jnp.pad(img_bf, ((0, 0), (0, 0), (20, 20)))
    assert jnp.array_equal(out_bf, ref_bf), "bf16 mismatch"

    # Budget too small to fold channels -> (tiles, channels) grid path.
    out_nofold = jax.block_until_ready(
        pad_to_square(img_tall, force_pallas=True, block_budget_bytes=1024))
    assert jnp.array_equal(out_nofold, ref_tall), "unfolded-channel mismatch"

    # Already square: identity.
    img_sq = jax.random.normal(k1, (4, 16, 16), dtype=jnp.float32)
    assert jnp.array_equal(pad_to_square(img_sq), img_sq), "square should be unchanged"

    # Default dispatcher: tiny images route to jnp.pad and stay correct.
    out_small = jax.block_until_ready(pad_to_square(img_tall))
    assert jnp.array_equal(out_small, ref_tall), "small-image dispatch mismatch"

    print("KERNEL_OK")
</pallas_src>

<mosaic_0001>
module attributes {stable_mosaic.version = 11 : i64} {
  func.func @_pad_width_kernel(%arg0: i32, %arg1: memref<4x8x8xf32, #tpu.memory_space<vmem>>, %arg2: memref<4x8x16xf32, #tpu.memory_space<vmem>>) attributes {dimension_semantics = [#tpu.dimension_semantics<parallel>], iteration_bounds = array<i64: 2>, scalar_prefetch = 0 : i64, scratch_operands = 0 : i64, tpu.core_type = #tpu.core_type<tc>, window_params = [{transform_indices = @transform_0, window_bounds = array<i64: 4, 8, 8>}, {transform_indices = @transform_1, window_bounds = array<i64: 4, 8, 16>}]} {
    %cst = arith.constant 0.000000e+00 : f32
    %0 = vector.broadcast %cst : f32 to vector<4x8x4xf32>
    %c0 = arith.constant 0 : index
    %c0_0 = arith.constant 0 : index
    %c0_1 = arith.constant 0 : index
    %1 = vector.load %arg2[%c0, %c0_0, %c0_1] : memref<4x8x16xf32, #tpu.memory_space<vmem>>, vector<4x8x4xf32>
    tpu.vector_store %arg2[%c0, %c0_0, %c0_1], %0 {strides = array<i32>} : memref<4x8x16xf32, #tpu.memory_space<vmem>>, vector<4x8x4xf32>,
    %c0_2 = arith.constant 0 : index
    %c0_3 = arith.constant 0 : index
    %c0_4 = arith.constant 0 : index
    %2 = vector.load %arg1[%c0_2, %c0_3, %c0_4] : memref<4x8x8xf32, #tpu.memory_space<vmem>>, vector<4x8x8xf32>
    %c0_5 = arith.constant 0 : index
    %c0_6 = arith.constant 0 : index
    %c4 = arith.constant 4 : index
    %3 = vector.load %arg2[%c0_5, %c0_6, %c4] : memref<4x8x16xf32, #tpu.memory_space<vmem>>, vector<4x8x8xf32>
    tpu.vector_store %arg2[%c0_5, %c0_6, %c4], %2 {strides = array<i32>} : memref<4x8x16xf32, #tpu.memory_space<vmem>>, vector<4x8x8xf32>,
    %cst_7 = arith.constant 0.000000e+00 : f32
    %4 = vector.broadcast %cst_7 : f32 to vector<4x8x4xf32>
    %c0_8 = arith.constant 0 : index
    %c0_9 = arith.constant 0 : index
    %c12 = arith.constant 12 : index
    %5 = vector.load %arg2[%c0_8, %c0_9, %c12] : memref<4x8x16xf32, #tpu.memory_space<vmem>>, vector<4x8x4xf32>
    tpu.vector_store %arg2[%c0_8, %c0_9, %c12], %4 {strides = array<i32>} : memref<4x8x16xf32, #tpu.memory_space<vmem>>, vector<4x8x4xf32>,
    return
  }
  func.func @transform_0(%arg0: i32) -> (i32, i32, i32) {
    %c0_i32 = arith.constant 0 : i32
    %c0_i32_0 = arith.constant 0 : i32
    %c0_i32_1 = arith.constant 0 : i32
    return %c0_i32, %arg0, %c0_i32_0 : i32, i32, i32
  }
  func.func @transform_1(%arg0: i32) -> (i32, i32, i32) {
    %c0_i32 = arith.constant 0 : i32
    %c0_i32_0 = arith.constant 0 : i32
    %c0_i32_1 = arith.constant 0 : i32
    return %c0_i32, %arg0, %c0_i32_0 : i32, i32, i32
  }
}

</mosaic_0001>

<bundles_post_ra>
// kernel: tpu_custom_call.1
= control target key start
LH: loop header
LB: loop body
LE: loop exit
PB: predicated region body
PF: predicated region fallthrough
CT: control target
= control target key end

     0   :  { %6 = vsyncpa [#allocation4], 0  ;;  %s529_s0 = inlined_call_operand.vmem [shape: f32[4,16,8], index: 0, kind: input, shape index: {}]   ;;  %s530_s1 = inlined_call_operand.hbm [shape: f32[4,16,16], index: 1, kind: output, shape index: {}]  }
   0x1   :  { %8 = vsyncpa [#allocation4 + $0x1], 0  ;;  %s413_s6 = smov 0   ;;  %s415_s7 = smov 0  }
   0x2   :  { %s417_s8 = smov 0   ;;  %s419_s9 = smov 0  }
   0x3 LB: > { %s276_s10 = sadd.s32 4294967295, %s395_s9   ;;  %s277_s11 = sadd.s32 4294967294, %s395_s9   ;;  %s395_s9 = sphi %s419_s9, %s536_s9   ;;  %s391_s8 = sphi %s417_s8, %s535_s8   ;;  %s387_s7 = sphi %s415_s7, %s534_s7   ;;  %s383_s6 = sphi %s413_s6, %s533_s6  }
   0x4   : > { %s436_s12 = sadd.s32 1, %s395_s9   ;;  %s21_s13 = sadd.s32 1, %s391_s8 }
   0x5   : > { %s18_s14 = ssub.s32 %s395_s9, %s436_s12  ;;  %p28_p0 = scmp.ne.s32.totalorder %s391_s8, %s387_s7 }
   0x6   : > { %p19_p1 = scmp.eq.s32.totalorder %s18_s14, 0  ;;  %p29_p2 = scmp.eq.s32.totalorder %s395_s9, 0 }
   0x7   : > { %p58_p3 = scmp.eq.s32.totalorder %s276_s10, 1  ;;  %p63_p4 = scmp.ne.s32.totalorder %s387_s7, %s383_s6 }
   0x8   : > { %s449_s15 = scalar_select %p19_p1, %s391_s8, %s21_s13  }
   0x9   : > { %p30_p5 = por %p29_p2, %p28_p0  ;;  %p451_p6 = por %p58_p3, %p28_p0 }
   0xa   : > { %p64_p7 = scmp.eq.s32.totalorder %s277_s11, 1  ;;  %p279_p9 = scmp.ge.s32.totalorder %s395_s9, 2 }
   0xc   : > { %p455_p8 = por %p64_p7, %p63_p4  ;;  %80 = sbr.rel (%p279_p9) target bundleno = 26 (0x1a), region = 16 }
  0x13   : > { %83 = sbr.rel (!%p30_p5) target bundleno = 26 (0x1a), region = 20  ;;  %s85_s18 = sand.u32 (%p30_p5), 1, %s391_s8  }
  0x14   : > { %s281_s19 = sshll.u32 (%p30_p5), %s395_s9, 3  ;;  %s280_s20 = sshll.u32 (%p30_p5), %s85_s18, 5 }
  0x15   : > { %s89_s23 = scalar_lea.vmem (%p30_p5), %s529_s0, %s281_s19  ;;  %s87_s24 = scalar_lea.vmem (%p30_p5), [#allocation2], %s280_s20 }
  0x16   : > { %v123_v0 = vld [vmem:[%s89_s23] sm:$0xff] (%p30_p5)  ;;  %v125_v1 = vld [vmem:[%s89_s23 + $0x10] sm:$0xff] (%p30_p5) }
  0x17   : > { %v127_v2 = vld [vmem:[%s89_s23 + $0x20] sm:$0xff] (%p30_p5)  ;;  %124 = vst [vmem:[%s87_s24] sm:$0xff] (%p30_p5), %v123_v0  ;;  %126 = vst [vmem:[%s87_s24 + $0x8] sm:$0xff] (%p30_p5), %v125_v1  ;;  %v129_v3 = vld [vmem:[%s89_s23 + $0x30] sm:$0xff] (%p30_p5) }
  0x18   : > { %128 = vst [vmem:[%s87_s24 + $0x10] sm:$0xff] (%p30_p5), %v127_v2  ;;  %130 = vst [vmem:[%s87_s24 + $0x18] sm:$0xff] (%p30_p5), %v129_v3 }
  0x1a PF: > { %p282_p10 = scmp.ge.s32.totalorder %s395_s9, 1  ;;  %p135_p11 = scmp.lt.s32.totalorder %s395_s9, 3 }
  0x1c   : > { %p136_p12 = pnand %p282_p10, %p135_p11 }
  0x1d   : > { %s142_s25 = sand.u32 (!%p136_p12), 1, %s387_s7   ;;  %vm161_vm0 = vcmask (!%p136_p12), 31744   ;;  %v397_v6 = vmov (!%p136_p12), 0.0   ;;  %s398_s29 = smov (!%p136_p12), 4   ;;  %vm186_vm1 = vcmask (!%p136_p12), 97312   ;;  %vm191_vm2 = vcmask (!%p136_p12), 130144  }
  0x1e   : > { %139 = sbr.rel (%p136_p12) target bundleno = 169 (0xa9), region = 58  ;;  %s283_s26 = sshll.u32 (!%p136_p12), %s142_s25, 5 }
  0x1f   : > { %s144_s27 = scalar_lea.vmem (!%p136_p12), [#allocation2], %s283_s26  ;;  %s160_s28 = scalar_lea.vmem (!%p136_p12), [#allocation3], %s283_s26 }
  0x20   : > { %v168_v4 = vld [vmem:[%s144_s27 + $0x10] sm:$0xff] (!%p136_p12)  ;;  %v166_v5 = vld [vmem:[%s144_s27] sm:$0xff] (!%p136_p12)  ;;  %164 = vst.msk [vmem:[%s160_s28 + $0x10] sm:$0xff] (!%p136_p12), %vm161_vm0, %v397_v6  ;;  %162 = vst.msk [vmem:[%s160_s28] sm:$0xff] (!%p136_p12), %vm161_vm0, %v397_v6  ;;  %s286_s30 = sshll.u32 (!%p136_p12), %s276_s10, 7  ;;  %s209_s2 = sshll.u32 (!%p136_p12), %s160_s28, 4  ;;  %s481_s2 = int_to_ptr.vmem [resolvable:$true] %s209_s2 }
  0x21   : > { %163 = vst.msk [vmem:[%s160_s28 + $0x8] sm:$0xff] (!%p136_p12), %vm161_vm0, %v397_v6  ;;  %165 = vst.msk [vmem:[%s160_s28 + $0x18] sm:$0xff] (!%p136_p12), %vm161_vm0, %v397_v6  ;;  %178 = vrot.lane.b32.xlu1 (!%p136_p12), %v168_v4, %s398_s29  ;;  %174 = vrot.lane.b32.xlu0 (!%p136_p12), %v166_v5, %s398_s29  ;;  %s479_s5 = scalar_lea.hbm (!%p136_p12), %s530_s1, %s286_s30  ;;  %s487_s10 = scalar_lea.sflag (!%p136_p12), [#allocation4], %s142_s25 }
  0x22   : > { %v169_v7 = vld [vmem:[%s144_s27 + $0x18] sm:$0xff] (!%p136_p12)  ;;  %v167_v8 = vld [vmem:[%s144_s27 + $0x8] sm:$0xff] (!%p136_p12)  ;;  %s333_s11 = scalar_lea.vmem (!%p136_p12), %s481_s2, 512  ;;  %s399_s13 = smov (!%p136_p12), [#allocation3]  }
  0x23   : > { %p334_p13 = scmp.ne.s32.totalorder (!%p136_p12), %s481_s2, %s333_s11  ;;  %s337_s14 = sshll.u32 (!%p136_p12), %s399_s13, 4  ;;  %s338_s14 = int_to_ptr.vmem [resolvable:$false] %s337_s14 }
  0x24   : > { %s339_s18 = scalar_lea.vmem (!%p136_p12), %s338_s14, 1024  ;;  %p340_p2 = scmp.lt.s32.totalorder (!%p136_p12), %s481_s2, %s338_s14 }
  0x25   : > { %180 = vrot.lane.b32.xlu1 %v169_v7, %s398_s29  ;;  %176 = vrot.lane.b32.xlu0 %v167_v8, %s398_s29  ;;  %p335_p0 = pnand %p334_p13, %p451_p6  ;;  %p341_p3 = scmp.lt.s32.totalorder %s339_s18, %s333_s11 }
  0x27   : > { %p336_p1 = pneg %p335_p0  ;;  %p342_p4 = por %p341_p3, %p340_p2 }
  0x29   : > { %p343_p5 = pnand %p342_p4, %p336_p1 }
  0x93   : > { %v179_v9 = vpop.permute.xlu1 %178  ;;  %v175_v10 = vpop.permute.xlu0 %174 }
  0x94   : > { %189 = vst.msk [vmem:[%s160_s28 + $0x10] sm:$0xff] %vm186_vm1, %v179_v9  ;;  %187 = vst.msk [vmem:[%s160_s28] sm:$0xff] %vm186_vm1, %v175_v10 }
  0x95   : > { %194 = vst.msk [vmem:[%s160_s28 + $0x10] sm:$0xff] %vm191_vm2, %v397_v6  ;;  %192 = vst.msk [vmem:[%s160_s28] sm:$0xff] %vm191_vm2, %v397_v6 }
  0x97   : > { %v181_v11 = vpop.permute.xlu1 %180  ;;  %v177_v12 = vpop.permute.xlu0 %176 }
  0x98   : > { %190 = vst.msk [vmem:[%s160_s28 + $0x18] sm:$0xff] %vm186_vm1, %v181_v11  ;;  %188 = vst.msk [vmem:[%s160_s28 + $0x8] sm:$0xff] %vm186_vm1, %v177_v12 }
  0x99   : > { %195 = vst.msk [vmem:[%s160_s28 + $0x18] sm:$0xff] %vm191_vm2, %v397_v6  ;;  %193 = vst.msk [vmem:[%s160_s28 + $0x8] sm:$0xff] %vm191_vm2, %v397_v6 }
  0x9a   : > { %346 = shalt.err (!%p343_p5)
}
  0x9b   : > { %s347_s19 = scalar_lea.hbm %s479_s5, 512  ;;  %s351_s22 = scalar_lea.hbm %s530_s1, 1024 }
  0x9c   : > { %p348_p7 = scmp.ne.s32.totalorder %s479_s5, %s347_s19  ;;  %p352_p12 = scmp.lt.u32.totalorder %s479_s5, %s530_s1 }
  0x9d   : > { %p353_p13 = scmp.lt.u32.totalorder %s351_s22, %s347_s19  ;;  %p355_p1 = scmp.lt.u32.totalorder %s347_s19, %s479_s5 }
  0x9e   : > { %p349_p10 = pnand %p348_p7, %p451_p6 }
  0x9f   : > { %p354_p0 = por %p353_p13, %p352_p12 }
  0xa0   : > { %p350_p11 = pneg %p349_p10 }
  0xa1   : > { %p356_p2 = por %p355_p1, %p354_p0 }
  0xa3   : > { %p357_p3 = pnand %p356_p2, %p350_p11 }
  0xa5   : > { %360 = shalt.err (!%p357_p3)
}
  0xa6   : > { %s400_s25 = smov 128   ;;  %s401_s26 = smov 256  }
  0xa7   : > { %s402_s27 = smov 8  }
  0xa8   : > { %289 = dma.vmem_to_hbm [thread:$0]  (%p451_p6), %s481_s2, 512, %s479_s5, %s487_s10, %s400_s25, %s401_s26, %s402_s27  }
  0xa9 PF: > { %s224_s28 = sand.u32 1, %s383_s6   ;;  %p292_p4 = pnand %p279_p9, %p455_p8 }
  0xaa   : > { %s225_s29 = scalar_lea.sflag [#allocation4], %s224_s28 }
  0xab   : > { %378 = dma.done.wait (!%p292_p4), %s225_s29, 512  }
  0xac   : > { %380 = vsyncadd (!%p292_p4), %s225_s29, 4294966784  ;;  %p11_p5 = scmp.ge.s32.totalorder %s436_s12, 4   ;;  %s533_s6 = smov %s387_s7 }
  0xad   : > { %s534_s7 = smov %s391_s8  ;;  %s535_s8 = smov %s449_s15 }
  0xae   : > { %s536_s9 = smov %s436_s12  ;;  %13 = sbr.rel (!%p11_p5) target bundleno = 3 (0x3), region = 102 }
  0xb5   :  { %230 = vsyncpa [#allocation4], 1 }
  0xb6   :  { %232 = vsyncpa [#allocation4 + $0x1], 1 }

</bundles_post_ra>
